<compile_context>
chip_gen: v7x
topology: tpu7x:2x2x1
jax: 0.10.0
libtpu: 0.0.40
codegen_flags: <defaults>
</compile_context>

<pallas_src>
import functools

import jax
import jax.numpy as jnp
from jax.experimental import pallas as pl
from jax.experimental.pallas import tpu as pltpu


_VMEM_LIMIT = 64 * 1024 * 1024  # raise scoped VMEM above the 16/32 MiB default


def _round_up(x, m):
    return (x + m - 1) // m * m


def _default_row_tile():
    """128 on v5e (4x128x128 MXU), 256 on v6e/v7x (256x256 MXU)."""
    try:
        kind = jax.devices()[0].device_kind.lower()
    except Exception:
        return 256
    if "v5 lite" in kind or "v5e" in kind or "v5lite" in kind:
        return 128
    return 256


def _choose_tiles(n_nodes, row_tile_pref):
    """Pad N and pick (row_tile, k_tile) so both divide the padded N."""
    if n_nodes <= 128:
        n_pad = 128
    elif n_nodes <= 256:
        n_pad = 256
    else:
        n_pad = _round_up(n_nodes, 512)
    row_tile = min(row_tile_pref, n_pad)
    k_tile = min(512, n_pad)
    return n_pad, row_tile, k_tile


# ----------------------------------------------------------------------------
# Kernels
# ----------------------------------------------------------------------------
def _xw_kernel(x_ref, w_ref, xw_ref):
    """Stage 1: XW tile = x_tile[tm, Cp] @ W[Cp, 2Cp], stored bf16 for streaming."""
    xw = jnp.dot(x_ref[...], w_ref[...], preferred_element_type=jnp.float32)
    xw_ref[...] = xw.astype(xw_ref.dtype)


def _agg_glu_kernel(a_ref, xw_ref, x_ref, b_ref, o_ref, acc_ref, *, cp):
    """Stage 2: acc += A_tile @ XW_tile; on last k: bias + GLU + residual."""
    k = pl.program_id(1)

    @pl.when(k == 0)
    def _():
        acc_ref[...] = jnp.zeros_like(acc_ref)

    acc_ref[...] += jnp.dot(a_ref[...], xw_ref[...],
                            preferred_element_type=jnp.float32)

    @pl.when(k == pl.num_programs(1) - 1)
    def _():
        h = acc_ref[...] + b_ref[...]
        val = h[:, :cp]              # lane-aligned: cp is a multiple of 128
        gate = h[:, cp:]
        out = val * jax.nn.sigmoid(gate) + x_ref[...]   # residual (fp32)
        o_ref[...] = out.astype(o_ref.dtype)


# ----------------------------------------------------------------------------
# Per-layer wrapper
# ----------------------------------------------------------------------------
def _ltconv_layer(a_bf16, x, w, b, *, row_tile, k_tile):
    n_pad, cp = x.shape
    two_cp = 2 * cp

    # Stage 1: XW = x @ W, computed once per layer (row-tiled), stored bf16.
    xw = pl.pallas_call(
        _xw_kernel,
        out_shape=jax.ShapeDtypeStruct((n_pad, two_cp), jnp.bfloat16),
        grid_spec=pltpu.PrefetchScalarGridSpec(
            num_scalar_prefetch=0,
            grid=(n_pad // row_tile,),
            in_specs=[
                pl.BlockSpec((row_tile, cp), lambda i: (i, 0)),
                pl.BlockSpec((cp, two_cp), lambda i: (0, 0)),
            ],
            out_specs=pl.BlockSpec((row_tile, two_cp), lambda i: (i, 0)),
        ),
        compiler_params=pltpu.CompilerParams(
            dimension_semantics=("parallel",),
            vmem_limit_bytes=_VMEM_LIMIT),
    )(x, w)

    # Stage 2: out = GLU(A_hat @ XW + b) + x, tiled (rows parallel, K arbitrary).
    kernel = functools.partial(_agg_glu_kernel, cp=cp)
    out = pl.pallas_call(
        kernel,
        out_shape=jax.ShapeDtypeStruct((n_pad, cp), x.dtype),
        grid_spec=pltpu.PrefetchScalarGridSpec(
            num_scalar_prefetch=0,
            grid=(n_pad // row_tile, n_pad // k_tile),
            in_specs=[
                pl.BlockSpec((row_tile, k_tile), lambda i, k: (i, k)),   # A_hat
                pl.BlockSpec((k_tile, two_cp), lambda i, k: (k, 0)),     # XW
                pl.BlockSpec((row_tile, cp), lambda i, k: (i, 0)),       # residual x
                pl.BlockSpec((1, two_cp), lambda i, k: (0, 0)),          # bias
            ],
            out_specs=pl.BlockSpec((row_tile, cp), lambda i, k: (i, 0)),
            scratch_shapes=[pltpu.VMEM((row_tile, two_cp), jnp.float32)],
        ),
        compiler_params=pltpu.CompilerParams(
            dimension_semantics=("parallel", "arbitrary"),
            vmem_limit_bytes=_VMEM_LIMIT),
        input_output_aliases={2: 0},   # residual x is updated in place
    )(a_bf16, xw, x, b)
    return out


# ----------------------------------------------------------------------------
# Forward pass
# ----------------------------------------------------------------------------
def _pad_glu_params(w, b, c, cp):
    """Pad [C,2C] GLU weight / [1,2C] bias to lane-dense [Cp,2Cp] / [1,2Cp]."""
    wp = jnp.zeros((cp, 2 * cp), jnp.float32)
    wp = wp.at[:c, :c].set(w[:, :c])           # value half
    wp = wp.at[:c, cp:cp + c].set(w[:, c:])    # gate half
    bp = jnp.zeros((1, 2 * cp), jnp.float32)
    bp = bp.at[:, :c].set(b[:, :c])
    bp = bp.at[:, cp:cp + c].set(b[:, c:])
    return wp, bp


def ltconv_forward(x, a_hat, weights, biases):
    n, c = x.shape
    n_pad, row_tile, k_tile = _choose_tiles(n, _default_row_tile())
    cp = _round_up(c, 128)

    xp = jnp.zeros((n_pad, cp), jnp.float32).at[:n, :c].set(
        x.astype(jnp.float32))
    # A_hat is the bandwidth-dominant operand: stream it in bf16 (fp32 accum).
    ap = jnp.zeros((n_pad, n_pad), jnp.float32).at[:n, :n].set(a_hat)
    ap = ap.astype(jnp.bfloat16)

    for w, b in zip(weights, biases):
        wp, bp = _pad_glu_params(w, b, c, cp)
        xp = _ltconv_layer(ap, xp, wp, bp, row_tile=row_tile, k_tile=k_tile)
    return xp[:n, :c].astype(x.dtype)


def ltconv_reference(x, a_hat, weights, biases):
    """Pure-JAX fp32 reference with identical semantics."""
    for w, b in zip(weights, biases):
        h = a_hat @ (x @ w) + b
        c = x.shape[-1]
        x = h[:, :c] * jax.nn.sigmoid(h[:, c:]) + x
    return x


# ----------------------------------------------------------------------------
# Glue: graph / params
# ----------------------------------------------------------------------------
def build_gcn_norm_adjacency(edge_index, num_nodes):
    """Dense D^{-1/2}(A+I)D^{-1/2}, PyG GCNConv convention (edge s->t aggregates
    at t). Matches gcn_norm's add_remaining_self_loops: explicit self-loop edges
    are replaced by a single unit self-loop (not double counted)."""
    src = edge_index[0]
    dst = edge_index[1]
    ew = jnp.where(src == dst, 0.0, 1.0)        # drop explicit self loops
    a = jnp.zeros((num_nodes, num_nodes), dtype=jnp.float32).at[dst, src].add(ew)
    a = a + jnp.eye(num_nodes, dtype=jnp.float32)   # one unit self loop per node
    deg = a.sum(axis=1)
    dinv = jnp.where(deg > 0, 1.0 / jnp.sqrt(deg), 0.0)
    return dinv[:, None] * a * dinv[None, :]


def init_params(key, channels, num_layers):
    """Deterministic GCNConv params: glorot-uniform weights [C, 2C], zero bias."""
    weights, biases = [], []
    out_channels = 2 * channels
    limit = (6.0 / (channels + out_channels)) ** 0.5
    for _ in range(num_layers):
        key, sub = jax.random.split(key)
        w = jax.random.uniform(
            sub, (channels, out_channels), dtype=jnp.float32,
            minval=-limit, maxval=limit)
        b = jnp.zeros((1, out_channels), dtype=jnp.float32)
        weights.append(w)
        biases.append(b)
    return weights, biases


if __name__ == "__main__":
    NUM_NODES = 16
    CHANNELS = 32
    NUM_LAYERS = 2
    NUM_EDGES = 32

    key = jax.random.PRNGKey(0)
    k_x, k_e, k_p = jax.random.split(key, 3)

    x = jax.random.normal(k_x, (NUM_NODES, CHANNELS), dtype=jnp.float32)
    edge_index = jax.random.randint(k_e, (2, NUM_EDGES), 0, NUM_NODES)

    a_hat = build_gcn_norm_adjacency(edge_index, NUM_NODES)
    weights, biases = init_params(k_p, CHANNELS, NUM_LAYERS)

    fwd = jax.jit(ltconv_forward)
    out = fwd(x, a_hat, weights, biases)
    out = jax.block_until_ready(out)

    ref = ltconv_reference(x, a_hat, weights, biases)
    assert out.shape == (NUM_NODES, CHANNELS)
    # bf16 streaming of A_hat / XW (fp32 accumulation) -> relaxed tolerance.
    assert jnp.allclose(out, ref, atol=5e-2, rtol=5e-2), "mismatch vs reference"

    print("KERNEL_OK")
</pallas_src>

<mosaic_0001>
module attributes {stable_mosaic.version = 11 : i64} {
  func.func @_xw_kernel(%arg0: i32, %arg1: memref<128x128xf32, #tpu.memory_space<vmem>>, %arg2: memref<128x256xf32, #tpu.memory_space<vmem>>, %arg3: memref<128x256xbf16, #tpu.memory_space<vmem>>) attributes {dimension_semantics = [#tpu.dimension_semantics<parallel>], iteration_bounds = array<i64: 1>, scalar_prefetch = 0 : i64, scratch_operands = 0 : i64, tpu.core_type = #tpu.core_type<tc>, window_params = [{transform_indices = @transform_0, window_bounds = array<i64: 128, 128>}, {pipeline_mode = #tpu.pipeline_mode<synchronous>, transform_indices = @transform_1, window_bounds = array<i64: 128, 256>}, {transform_indices = @transform_2, window_bounds = array<i64: 128, 256>}]} {
    %c0 = arith.constant 0 : index
    %c0_0 = arith.constant 0 : index
    %0 = vector.load %arg1[%c0, %c0_0] : memref<128x128xf32, #tpu.memory_space<vmem>>, vector<128x128xf32>
    %c0_1 = arith.constant 0 : index
    %c0_2 = arith.constant 0 : index
    %1 = vector.load %arg2[%c0_1, %c0_2] : memref<128x256xf32, #tpu.memory_space<vmem>>, vector<128x256xf32>
    %cst = arith.constant dense<0.000000e+00> : vector<128x256xf32>
    %2 = tpu.matmul %0, %1, %cst {dimension_numbers = #tpu.dot_dimension_numbers<[1], [0], [0], [1], [0, 0, 1, 1], [], []>} : vector<128x128xf32>, vector<128x256xf32>, vector<128x256xf32> -> vector<128x256xf32>
    %3 = arith.truncf %2 : vector<128x256xf32> to vector<128x256xbf16>
    %c0_3 = arith.constant 0 : index
    %c0_4 = arith.constant 0 : index
    %4 = vector.load %arg3[%c0_3, %c0_4] : memref<128x256xbf16, #tpu.memory_space<vmem>>, vector<128x256xbf16>
    tpu.vector_store %arg3[%c0_3, %c0_4], %3 {strides = array<i32>} : memref<128x256xbf16, #tpu.memory_space<vmem>>, vector<128x256xbf16>,
    return
  }
  func.func @transform_0(%arg0: i32) -> (i32, i32) {
    %c0_i32 = arith.constant 0 : i32
    %c0_i32_0 = arith.constant 0 : i32
    return %arg0, %c0_i32 : i32, i32
  }
  func.func @transform_1(%arg0: i32) -> (i32, i32) {
    %c0_i32 = arith.constant 0 : i32
    %c0_i32_0 = arith.constant 0 : i32
    %c0_i32_1 = arith.constant 0 : i32
    return %c0_i32, %c0_i32_0 : i32, i32
  }
  func.func @transform_2(%arg0: i32) -> (i32, i32) {
    %c0_i32 = arith.constant 0 : i32
    %c0_i32_0 = arith.constant 0 : i32
    return %arg0, %c0_i32 : i32, i32
  }
}

module attributes {stable_mosaic.version = 11 : i64} {
  func.func @_agg_glu_kernel(%arg0: i32, %arg1: i32, %arg2: memref<128x128xbf16, #tpu.memory_space<vmem>>, %arg3: memref<128x256xbf16, #tpu.memory_space<vmem>>, %arg4: memref<128x128xf32, #tpu.memory_space<vmem>>, %arg5: memref<1x256xf32, #tpu.memory_space<vmem>>, %arg6: memref<128x128xf32, #tpu.memory_space<vmem>>, %arg7: memref<128x256xf32, #tpu.memory_space<vmem>>) attributes {dimension_semantics = [#tpu.dimension_semantics<parallel>, #tpu.dimension_semantics<arbitrary>], iteration_bounds = array<i64: 1, 1>, scalar_prefetch = 0 : i64, scratch_operands = 1 : i64, tpu.core_type = #tpu.core_type<tc>, window_params = [{transform_indices = @transform_0, window_bounds = array<i64: 128, 128>}, {transform_indices = @transform_1, window_bounds = array<i64: 128, 256>}, {transform_indices = @transform_2, window_bounds = array<i64: 128, 128>}, {pipeline_mode = #tpu.pipeline_mode<synchronous>, transform_indices = @transform_3, window_bounds = array<i64: 1, 256>}, {transform_indices = @transform_4, window_bounds = array<i64: 128, 128>}]} {
    %c0_i32 = arith.constant 0 : i32
    %0 = arith.cmpi eq, %arg1, %c0_i32 : i32
    %1 = arith.extui %0 : i1 to i32
    %c0_i32_0 = arith.constant 0 : i32
    %2 = arith.cmpi ne, %1, %c0_i32_0 : i32
    scf.if %2 {
      %cst_10 = arith.constant 0.000000e+00 : f32
      %12 = vector.broadcast %cst_10 : f32 to vector<128x256xf32>
      %c0_11 = arith.constant 0 : index
      %c0_12 = arith.constant 0 : index
      %13 = vector.load %arg7[%c0_11, %c0_12] : memref<128x256xf32, #tpu.memory_space<vmem>>, vector<128x256xf32>
      tpu.vector_store %arg7[%c0_11, %c0_12], %12 {strides = array<i32>} : memref<128x256xf32, #tpu.memory_space<vmem>>, vector<128x256xf32>,
    } else {
    }
    %c0 = arith.constant 0 : index
    %c0_1 = arith.constant 0 : index
    %3 = vector.load %arg7[%c0, %c0_1] : memref<128x256xf32, #tpu.memory_space<vmem>>, vector<128x256xf32>
    %c0_2 = arith.constant 0 : index
    %c0_3 = arith.constant 0 : index
    %4 = vector.load %arg2[%c0_2, %c0_3] : memref<128x128xbf16, #tpu.memory_space<vmem>>, vector<128x128xbf16>
    %c0_4 = arith.constant 0 : index
    %c0_5 = arith.constant 0 : index
    %5 = vector.load %arg3[%c0_4, %c0_5] : memref<128x256xbf16, #tpu.memory_space<vmem>>, vector<128x256xbf16>
    %cst = arith.constant dense<0.000000e+00> : vector<128x256xf32>
    %6 = tpu.matmul %4, %5, %cst {dimension_numbers = #tpu.dot_dimension_numbers<[1], [0], [0], [1], [0, 0, 1, 1], [], []>} : vector<128x128xbf16>, vector<128x256xbf16>, vector<128x256xf32> -> vector<128x256xf32>
    %7 = arith.addf %3, %6 : vector<128x256xf32>
    %c0_6 = arith.constant 0 : index
    %c0_7 = arith.constant 0 : index
    %8 = vector.load %arg7[%c0_6, %c0_7] : memref<128x256xf32, #tpu.memory_space<vmem>>, vector<128x256xf32>
    tpu.vector_store %arg7[%c0_6, %c0_7], %7 {strides = array<i32>} : memref<128x256xf32, #tpu.memory_space<vmem>>, vector<128x256xf32>,
    %c0_i32_8 = arith.constant 0 : i32
    %9 = arith.cmpi eq, %arg1, %c0_i32_8 : i32
    %10 = arith.extui %9 : i1 to i32
    %c0_i32_9 = arith.constant 0 : i32
    %11 = arith.cmpi ne, %10, %c0_i32_9 : i32
    scf.if %11 {
      %c0_10 = arith.constant 0 : index
      %c0_11 = arith.constant 0 : index
      %12 = vector.load %arg7[%c0_10, %c0_11] : memref<128x256xf32, #tpu.memory_space<vmem>>, vector<128x256xf32>
      %c0_12 = arith.constant 0 : index
      %c0_13 = arith.constant 0 : index
      %13 = vector.load %arg5[%c0_12, %c0_13] : memref<1x256xf32, #tpu.memory_space<vmem>>, vector<1x256xf32>
      %14 = vector.broadcast %13 : vector<1x256xf32> to vector<128x256xf32>
      %15 = arith.addf %12, %14 : vector<128x256xf32>
      %16 = vector.extract_strided_slice %15 {offsets = [0, 0], sizes = [128, 128], strides = [1, 1]} : vector<128x256xf32> to vector<128x128xf32>
      %17 = vector.extract_strided_slice %15 {offsets = [0, 128], sizes = [128, 128], strides = [1, 1]} : vector<128x256xf32> to vector<128x128xf32>
      %18 = arith.negf %17 : vector<128x128xf32>
      %19 = math.exp %18 : vector<128x128xf32>
      %cst_14 = arith.constant 1.000000e+00 : f32
      %20 = vector.broadcast %cst_14 : f32 to vector<128x128xf32>
      %21 = arith.addf %20, %19 : vector<128x128xf32>
      %22 = arith.divf %20, %21 : vector<128x128xf32>
      %23 = arith.mulf %16, %22 : vector<128x128xf32>
      %c0_15 = arith.constant 0 : index
      %c0_16 = arith.constant 0 : index
      %24 = vector.load %arg4[%c0_15, %c0_16] : memref<128x128xf32, #tpu.memory_space<vmem>>, vector<128x128xf32>
      %25 = arith.addf %23, %24 : vector<128x128xf32>
      %c0_17 = arith.constant 0 : index
      %c0_18 = arith.constant 0 : index
      %26 = vector.load %arg6[%c0_17, %c0_18] : memref<128x128xf32, #tpu.memory_space<vmem>>, vector<128x128xf32>
      tpu.vector_store %arg6[%c0_17, %c0_18], %25 {strides = array<i32>} : memref<128x128xf32, #tpu.memory_space<vmem>>, vector<128x128xf32>,
    } else {
    }
    return
  }
  func.func @transform_0(%arg0: i32, %arg1: i32) -> (i32, i32) {
    %c0_i32 = arith.constant 0 : i32
    return %arg0, %arg1 : i32, i32
  }
  func.func @transform_1(%arg0: i32, %arg1: i32) -> (i32, i32) {
    %c0_i32 = arith.constant 0 : i32
    %c0_i32_0 = arith.constant 0 : i32
    return %arg1, %c0_i32 : i32, i32
  }
  func.func @transform_2(%arg0: i32, %arg1: i32) -> (i32, i32) {
    %c0_i32 = arith.constant 0 : i32
    %c0_i32_0 = arith.constant 0 : i32
    return %arg0, %c0_i32 : i32, i32
  }
  func.func @transform_3(%arg0: i32, %arg1: i32) -> (i32, i32) {
    %c0_i32 = arith.constant 0 : i32
    %c0_i32_0 = arith.constant 0 : i32
    %c0_i32_1 = arith.constant 0 : i32
    return %c0_i32, %c0_i32_0 : i32, i32
  }
  func.func @transform_4(%arg0: i32, %arg1: i32) -> (i32, i32) {
    %c0_i32 = arith.constant 0 : i32
    %c0_i32_0 = arith.constant 0 : i32
    return %arg0, %c0_i32 : i32, i32
  }
}

</mosaic_0001>

<bundles_post_ra>
// kernel: ltconv_forward.4
= control target key start
LH: loop header
LB: loop body
LE: loop exit
PB: predicated region body
PF: predicated region fallthrough
CT: control target
= control target key end

     0   :  { %7 = vsyncpa [#allocation3], 0  ;;  %s620_s0 = inlined_call_operand.hbm [shape: f32[128,128], index: 0, kind: input, shape index: {}]   ;;  %s621_s1 = inlined_call_operand.hbm [shape: f32[128,256], index: 1, kind: input, shape index: {}]   ;;  %s622_s2 = inlined_call_operand.hbm [shape: bf16[128,256], index: 2, kind: output, shape index: {}]  }
   0x1   :  { %8 = vsyncpa [#allocation6], 0 }
   0x2   :  { %9 = vsyncpa [#allocation4], 0  ;;  %s539_s9 = smov [#allocation2]   ;;  %s467_s13 = scalar_lea.hbm %s620_s0, 2048 }
   0x3   :  { %s15_s10 = sshll.u32 %s539_s9, 4  ;;  %p468_p0 = scmp.ne.s32.totalorder %s620_s0, %s467_s13  ;;  %s16_s10 = int_to_ptr.vmem [resolvable:$true] %s15_s10 }
   0x4   :  { %p471_p1 = scmp.lt.u32.totalorder %s467_s13, %s620_s0 }
   0x6   :  { %p473_p2 = pnand %p471_p1, %p468_p0 }
   0x8   :  { %476 = shalt.err (!%p473_p2)
}
   0x9   :  { %s477_s18 = scalar_lea.vmem %s16_s10, 2048  ;;  %p482_p4 = scmp.lt.s32.totalorder %s16_s10, %s16_s10 }
   0xa   :  { %p478_p3 = scmp.ne.s32.totalorder %s16_s10, %s477_s18  ;;  %p483_p5 = scmp.lt.s32.totalorder %s477_s18, %s477_s18 }
   0xc   :  { %p484_p6 = por %p483_p5, %p482_p4 }
   0xe   :  { %p485_p7 = pnand %p484_p6, %p478_p3 }
  0x10   :  { %488 = shalt.err (!%p485_p7)
}
  0x11   :  { %s540_s19 = smov 128   ;;  %s541_s20 = smov 8  }
  0x12   :  { %21 = dma.hbm_to_vmem [thread:$0]  %s620_s0, 2048, %s16_s10, [#allocation3], %s540_s19, %s540_s19, %s541_s20  }
  0x13   :  { %s542_s23 = smov [#allocation5]   ;;  %s489_s27 = scalar_lea.hbm %s621_s1, 4096 }
  0x14   :  { %s27_s24 = sshll.u32 %s542_s23, 4  ;;  %p490_p8 = scmp.ne.s32.totalorder %s621_s1, %s489_s27  ;;  %s28_s24 = int_to_ptr.vmem [resolvable:$true] %s27_s24 }
  0x15   :  { %p493_p9 = scmp.lt.u32.totalorder %s489_s27, %s621_s1 }
  0x17   :  { %p495_p10 = pnand %p493_p9, %p490_p8 }
  0x19   :  { %498 = shalt.err (!%p495_p10)
}
  0x1a   :  { %s499_s4 = scalar_lea.vmem %s28_s24, 4096  ;;  %p504_p12 = scmp.lt.s32.totalorder %s28_s24, %s28_s24 }
  0x1b   :  { %p500_p11 = scmp.ne.s32.totalorder %s28_s24, %s499_s4  ;;  %p505_p13 = scmp.lt.s32.totalorder %s499_s4, %s499_s4 }
  0x1d   :  { %p506_p0 = por %p505_p13, %p504_p12 }
  0x1f   :  { %p507_p1 = pnand %p506_p0, %p500_p11 }
  0x21   :  { %510 = shalt.err (!%p507_p1)
}
  0x22   :  { %s543_s0 = smov 256   ;;  %s544_s5 = smov 16  }
  0x23   :  { %33 = dma.hbm_to_vmem [thread:$0]  %s621_s1, 4096, %s28_s24, [#allocation6], %s543_s0, %s543_s0, %s544_s5  }
  0x24   :  { %533 = dma.done.wait [#allocation3], 2048  }
  0x25   :  { %534 = vsyncadd [#allocation3], 4294965248 }
  0x26   :  { %535 = dma.done.wait [#allocation6], 4096  }
  0x27   :  { %536 = vsyncadd [#allocation6], 4294963200  ;;  %v545_v0 = vmov 0.0   ;;  %v57_v1 = vld [vmem:[#allocation5 + $0x8] sm:$0xff]  ;;  %v59_v2 = vld [vmem:[#allocation5 + $0x18] sm:$0xff]  ;;  %s546_s1 = smov [#allocation7]  }
  0x28   :  { %152 = vmatprep.mubr.f32.mxu0 %v545_v0  ;;  %200 = vmatprep.mubr.f32.mxu1 %v545_v0  ;;  %v56_v3 = vld [vmem:[#allocation5] sm:$0xff]  ;;  %v411_v4 = vpack.c.bf16 %v59_v2, %v57_v1  ;;  %v58_v5 = vld [vmem:[#allocation5 + $0x10] sm:$0xff]  ;;  %v61_v6 = vld [vmem:[#allocation5 + $0x28] sm:$0xff]  ;;  %s366_s8 = sshll.u32 %s546_s1, 4  ;;  %s367_s8 = int_to_ptr.vmem [resolvable:$true] %s366_s8 }
  0x29   :  { %v63_v7 = vld [vmem:[#allocation5 + $0x38] sm:$0xff]  ;;  %v413_v8 = vpack.c.bf16 %v58_v5, %v56_v3  ;;  %v60_v10 = vld [vmem:[#allocation5 + $0x20] sm:$0xff]  ;;  %v62_v11 = vld [vmem:[#allocation5 + $0x30] sm:$0xff]  ;;  %s511_s9 = scalar_lea.vmem %s367_s8, 2048  ;;  %p516_p3 = scmp.lt.s32.totalorder %s367_s8, %s367_s8 }
  0x2a   :  { %v415_v9 = vpack.c.bf16 %v63_v7, %v61_v6  ;;  %v65_v12 = vld [vmem:[#allocation5 + $0x48] sm:$0xff]  ;;  %412 = vmatprep.subr.bf16.mxu0 %v411_v4  ;;  %443 = vmatprep.subr.bf16.mxu1 %v411_v4  ;;  %v67_v13 = vld [vmem:[#allocation5 + $0x58] sm:$0xff]  ;;  %v417_v14 = vpack.c.bf16 %v62_v11, %v60_v10  ;;  %v64_v16 = vld [vmem:[#allocation5 + $0x40] sm:$0xff]  ;;  %p512_p2 = scmp.ne.s32.totalorder %s367_s8, %s511_s9  ;;  %p517_p4 = scmp.lt.s32.totalorder %s511_s9, %s511_s9 }
  0x2b   :  { %414 = vmatpush1.bf16.msra.mxu0 %v413_v8  ;;  %451 = vmatpush1.bf16.msra.mxu1 %v413_v8  ;;  %v419_v15 = vpack.c.bf16 %v67_v13, %v65_v12  ;;  %v66_v17 = vld [vmem:[#allocation5 + $0x50] sm:$0xff]  ;;  %v69_v18 = vld [vmem:[#allocation5 + $0x68] sm:$0xff]  ;;  %v71_v19 = vld [vmem:[#allocation5 + $0x78] sm:$0xff] }
  0x2c   :  { %416 = vmatprep.subr.bf16.mxu0 %v415_v9  ;;  %444 = vmatprep.subr.bf16.mxu1 %v415_v9  ;;  %v421_v20 = vpack.c.bf16 %v66_v17, %v64_v16  ;;  %v423_v21 = vpack.c.bf16 %v71_v19, %v69_v18  ;;  %v68_v22 = vld [vmem:[#allocation5 + $0x60] sm:$0xff]  ;;  %v70_v23 = vld [vmem:[#allocation5 + $0x70] sm:$0xff]  ;;  %v73_v24 = vld [vmem:[#allocation5 + $0x88] sm:$0xff]  ;;  %p518_p5 = por %p517_p4, %p516_p3 }
  0x2d   :  { %v75_v25 = vld [vmem:[#allocation5 + $0x98] sm:$0xff]  ;;  %v425_v26 = vpack.c.bf16 %v70_v23, %v68_v22  ;;  %v72_v28 = vld [vmem:[#allocation5 + $0x80] sm:$0xff]  ;;  %v74_v29 = vld [vmem:[#allocation5 + $0x90] sm:$0xff] }
  0x2e   :  { %v427_v27 = vpack.c.bf16 %v75_v25, %v73_v24  ;;  %v77_v30 = vld [vmem:[#allocation5 + $0xa8] sm:$0xff]  ;;  %v79_v31 = vld [vmem:[#allocation5 + $0xb8] sm:$0xff]  ;;  %v429_v32 = vpack.c.bf16 %v74_v29, %v72_v28  ;;  %v76_v34 = vld [vmem:[#allocation5 + $0xa0] sm:$0xff]  ;;  %p519_p6 = pnand %p518_p5, %p512_p2 }
  0x2f   :  { %418 = vmatpush1.bf16.msra.mxu0 %v417_v14  ;;  %452 = vmatpush1.bf16.msra.mxu1 %v417_v14  ;;  %v431_v33 = vpack.c.bf16 %v79_v31, %v77_v30  ;;  %v78_v35 = vld [vmem:[#allocation5 + $0xb0] sm:$0xff]  ;;  %v81_v36 = vld [vmem:[#allocation5 + $0xc8] sm:$0xff]  ;;  %v83_v37 = vld [vmem:[#allocation5 + $0xd8] sm:$0xff] }
  0x30   :  { %420 = vmatprep.subr.bf16.mxu0 %v419_v15  ;;  %445 = vmatprep.subr.bf16.mxu1 %v419_v15  ;;  %v433_v38 = vpack.c.bf16 %v78_v35, %v76_v34  ;;  %v435_v39 = vpack.c.bf16 %v83_v37, %v81_v36  ;;  %v80_v40 = vld [vmem:[#allocation5 + $0xc0] sm:$0xff]  ;;  %v82_v41 = vld [vmem:[#allocation5 + $0xd0] sm:$0xff]  ;;  %v85_v42 = vld [vmem:[#allocation5 + $0xe8] sm:$0xff] }
  0x31   :  { %v87_v43 = vld [vmem:[#allocation5 + $0xf8] sm:$0xff]  ;;  %v437_v44 = vpack.c.bf16 %v82_v41, %v80_v40  ;;  %v84_v46 = vld [vmem:[#allocation5 + $0xe0] sm:$0xff]  ;;  %v86_v47 = vld [vmem:[#allocation5 + $0xf0] sm:$0xff] }
  0x32   :  { %v439_v45 = vpack.c.bf16 %v87_v43, %v85_v42  ;;  %v441_v48 = vpack.c.bf16 %v86_v47, %v84_v46  ;;  %v40_v49 = vld [vmem:[#allocation2] sm:$0xff]  ;;  %v41_v51 = vld [vmem:[#allocation2 + $0x8] sm:$0xff]  ;;  %v42_v53 = vld [vmem:[#allocation2 + $0x10] sm:$0xff] }
  0x33   :  { %422 = vmatpush1.bf16.msra.mxu0 %v421_v20  ;;  %453 = vmatpush1.bf16.msra.mxu1 %v421_v20  ;;  %v48_v50 = vld [vmem:[#allocation2 + $0x40] sm:$0xff]  ;;  %v49_v52 = vld [vmem:[#allocation2 + $0x48] sm:$0xff]  ;;  %v50_v54 = vld [vmem:[#allocation2 + $0x50] sm:$0xff] }
  0x34   :  { %424 = vmatprep.subr.bf16.mxu0 %v423_v21  ;;  %446 = vmatprep.subr.bf16.mxu1 %v423_v21  ;;  %v43_v55 = vld [vmem:[#allocation2 + $0x18] sm:$0xff]  ;;  %v44_v57 = vld [vmem:[#allocation2 + $0x20] sm:$0xff]  ;;  %v45_v59 = vld [vmem:[#allocation2 + $0x28] sm:$0xff] }
  0x35   :  { %v51_v56 = vld [vmem:[#allocation2 + $0x58] sm:$0xff]  ;;  %v52_v58 = vld [vmem:[#allocation2 + $0x60] sm:$0xff]  ;;  %v53_v60 = vld [vmem:[#allocation2 + $0x68] sm:$0xff] }
  0x36   :  { %v46_v61 = vld [vmem:[#allocation2 + $0x30] sm:$0xff]  ;;  %v47_v63 = vld [vmem:[#allocation2 + $0x38] sm:$0xff] }
  0x37   :  { %426 = vmatpush1.bf16.msra.mxu0 %v425_v26  ;;  %454 = vmatpush1.bf16.msra.mxu1 %v425_v26  ;;  %v54_v62 = vld [vmem:[#allocation2 + $0x70] sm:$0xff]  ;;  %v55_v1 = vld [vmem:[#allocation2 + $0x78] sm:$0xff] }
  0x38   :  { %428 = vmatprep.subr.bf16.mxu0 %v427_v27  ;;  %447 = vmatprep.subr.bf16.mxu1 %v427_v27 }
  0x3b   :  { %430 = vmatpush1.bf16.msra.mxu0 %v429_v32  ;;  %455 = vmatpush1.bf16.msra.mxu1 %v429_v32 }
  0x3c   :  { %432 = vmatprep.subr.bf16.mxu0 %v431_v33  ;;  %448 = vmatprep.subr.bf16.mxu1 %v431_v33 }
  0x3f   :  { %434 = vmatpush1.bf16.msra.mxu0 %v433_v38  ;;  %456 = vmatpush1.bf16.msra.mxu1 %v433_v38 }
  0x40   :  { %436 = vmatprep.subr.bf16.mxu0 %v435_v39  ;;  %449 = vmatprep.subr.bf16.mxu1 %v435_v39 }
  0x43   :  { %438 = vmatpush1.bf16.msra.mxu0 %v437_v44  ;;  %457 = vmatpush1.bf16.msra.mxu1 %v437_v44 }
  0x44   :  { %440 = vmatprep.subr.bf16.mxu0 %v439_v45  ;;  %450 = vmatprep.subr.bf16.mxu1 %v439_v45 }
  0x47   :  { %442 = vmatpush1.bf16.msra.mxu0 %v441_v48  ;;  %458 = vmatpush1.bf16.msra.mxu1 %v441_v48 }
  0x4a   :  { %153 = vmatmul.mubr.f32.vlgmr.msra.gmra.mrb[0].mxu0 %v40_v49  ;;  %201 = vmatmul.mubr.f32.vlgmr.msra.gmra.mrb[0].mxu1 %v48_v50 }
  0x4b   :  { %158 = vmatprep.mubr.f32.mxu0 %v545_v0  ;;  %206 = vmatprep.mubr.f32.mxu1 %v545_v0 }
  0x4e   :  { %159 = vmatmul.mubr.f32.gmra.mrb[2].mxu0 %v41_v51  ;;  %207 = vmatmul.mubr.f32.gmra.mrb[2].mxu1 %v49_v52 }
  0x4f   :  { %164 = vmatprep.mubr.f32.mxu0 %v545_v0  ;;  %212 = vmatprep.mubr.f32.mxu1 %v545_v0 }
  0x52   :  { %165 = vmatmul.mubr.f32.gmra.mrb[4].mxu0 %v42_v53  ;;  %213 = vmatmul.mubr.f32.gmra.mrb[4].mxu1 %v50_v54 }
  0x53   :  { %170 = vmatprep.mubr.f32.mxu0 %v545_v0  ;;  %218 = vmatprep.mubr.f32.mxu1 %v545_v0 }
  0x56   :  { %171 = vmatmul.mubr.f32.gmra.mrb[6].mxu0 %v43_v55  ;;  %219 = vmatmul.mubr.f32.gmra.mrb[6].mxu1 %v51_v56 }
  0x57   :  { %176 = vmatprep.mubr.f32.mxu0 %v545_v0  ;;  %224 = vmatprep.mubr.f32.mxu1 %v545_v0 }
  0x5a   :  { %177 = vmatmul.mubr.f32.gmra.mrb[8].mxu0 %v44_v57  ;;  %225 = vmatmul.mubr.f32.gmra.mrb[8].mxu1 %v52_v58 }
  0x5b   :  { %182 = vmatprep.mubr.f32.mxu0 %v545_v0  ;;  %230 = vmatprep.mubr.f32.mxu1 %v545_v0 }
  0x5e   :  { %183 = vmatmul.mubr.f32.gmra.mrb[10].mxu0 %v45_v59  ;;  %231 = vmatmul.mubr.f32.gmra.mrb[10].mxu1 %v53_v60 }
  0x5f   :  { %188 = vmatprep.mubr.f32.mxu0 %v545_v0  ;;  %236 = vmatprep.mubr.f32.mxu1 %v545_v0 }
  0x62   :  { %189 = vmatmul.mubr.f32.gmra.mrb[12].mxu0 %v46_v61  ;;  %237 = vmatmul.mubr.f32.gmra.mrb[12].mxu1 %v54_v62 }
  0x63   :  { %194 = vmatprep.mubr.f32.mxu0 %v545_v0  ;;  %242 = vmatprep.mubr.f32.mxu1 %v545_v0 }
  0x66   :  { %195 = vmatmul.mubr.f32.gmra.mrb[14].mxu0 %v47_v63  ;;  %243 = vmatmul.mubr.f32.gmra.mrb[14].mxu1 %v55_v1 }
 0x11d   :  { %v154_v2 = vpop.f32.mrb[0].mxu0  ;;  %v202_v3 = vpop.f32.mrb[0].mxu1 }
 0x11e   :  { %v156_v4 = vpop.f32.mrb[1].mxu0  ;;  %v204_v5 = vpop.f32.mrb[1].mxu1 }
 0x11f   :  { %v395_v6 = vpack.c.bf16 %v156_v4, %v154_v2  ;;  %v403_v7 = vpack.c.bf16 %v204_v5, %v202_v3 }
 0x121   :  { %345 = vst [vmem:[#allocation7] sm:$0xff] %v395_v6  ;;  %353 = vst [vmem:[#allocation7 + $0x40] sm:$0xff] %v403_v7  ;;  %v160_v8 = vpop.f32.mrb[2].mxu0  ;;  %v208_v9 = vpop.f32.mrb[2].mxu1 }
 0x122   :  { %v162_v10 = vpop.f32.mrb[3].mxu0  ;;  %v210_v11 = vpop.f32.mrb[3].mxu1 }
 0x123   :  { %v396_v12 = vpack.c.bf16 %v162_v10, %v160_v8  ;;  %v404_v13 = vpack.c.bf16 %v210_v11, %v208_v9 }
 0x125   :  { %346 = vst [vmem:[#allocation7 + $0x8] sm:$0xff] %v396_v12  ;;  %354 = vst [vmem:[#allocation7 + $0x48] sm:$0xff] %v404_v13  ;;  %v166_v0 = vpop.f32.mrb[4].mxu0  ;;  %v214_v14 = vpop.f32.mrb[4].mxu1 }
 0x126   :  { %v168_v15 = vpop.f32.mrb[5].mxu0  ;;  %v216_v16 = vpop.f32.mrb[5].mxu1 }
 0x127   :  { %v397_v17 = vpack.c.bf16 %v168_v15, %v166_v0  ;;  %v405_v18 = vpack.c.bf16 %v216_v16, %v214_v14 }
 0x129   :  { %347 = vst [vmem:[#allocation7 + $0x10] sm:$0xff] %v397_v17  ;;  %355 = vst [vmem:[#allocation7 + $0x50] sm:$0xff] %v405_v18  ;;  %v172_v19 = vpop.f32.mrb[6].mxu0  ;;  %v220_v20 = vpop.f32.mrb[6].mxu1 }
 0x12a   :  { %v174_v21 = vpop.f32.mrb[7].mxu0  ;;  %v222_v22 = vpop.f32.mrb[7].mxu1 }
 0x12b   :  { %v398_v23 = vpack.c.bf16 %v174_v21, %v172_v19  ;;  %v406_v24 = vpack.c.bf16 %v222_v22, %v220_v20 }
 0x12d   :  { %348 = vst [vmem:[#allocation7 + $0x18] sm:$0xff] %v398_v23  ;;  %356 = vst [vmem:[#allocation7 + $0x58] sm:$0xff] %v406_v24  ;;  %v178_v25 = vpop.f32.mrb[8].mxu0  ;;  %v226_v26 = vpop.f32.mrb[8].mxu1 }
 0x12e   :  { %v180_v27 = vpop.f32.mrb[9].mxu0  ;;  %v228_v28 = vpop.f32.mrb[9].mxu1 }
 0x12f   :  { %v399_v29 = vpack.c.bf16 %v180_v27, %v178_v25  ;;  %v407_v30 = vpack.c.bf16 %v228_v28, %v226_v26 }
 0x131   :  { %349 = vst [vmem:[#allocation7 + $0x20] sm:$0xff] %v399_v29  ;;  %357 = vst [vmem:[#allocation7 + $0x60] sm:$0xff] %v407_v30  ;;  %v184_v31 = vpop.f32.mrb[10].mxu0  ;;  %v232_v32 = vpop.f32.mrb[10].mxu1 }
 0x132   :  { %v186_v33 = vpop.f32.mrb[11].mxu0  ;;  %v234_v34 = vpop.f32.mrb[11].mxu1 }
 0x133   :  { %v400_v35 = vpack.c.bf16 %v186_v33, %v184_v31  ;;  %v408_v36 = vpack.c.bf16 %v234_v34, %v232_v32 }
 0x135   :  { %350 = vst [vmem:[#allocation7 + $0x28] sm:$0xff] %v400_v35  ;;  %358 = vst [vmem:[#allocation7 + $0x68] sm:$0xff] %v408_v36  ;;  %v190_v37 = vpop.f32.mrb[12].mxu0  ;;  %v238_v38 = vpop.f32.mrb[12].mxu1 }
 0x136   :  { %v192_v39 = vpop.f32.mrb[13].mxu0  ;;  %v240_v40 = vpop.f32.mrb[13].mxu1 }
 0x137   :  { %v401_v41 = vpack.c.bf16 %v192_v39, %v190_v37  ;;  %v409_v42 = vpack.c.bf16 %v240_v40, %v238_v38 }
 0x139   :  { %351 = vst [vmem:[#allocation7 + $0x30] sm:$0xff] %v401_v41  ;;  %359 = vst [vmem:[#allocation7 + $0x70] sm:$0xff] %v409_v42  ;;  %v196_v43 = vpop.f32.mrb[14].mxu0  ;;  %v244_v44 = vpop.f32.mrb[14].mxu1 }
 0x13a   :  { %v198_v45 = vpop.f32.mrb[15].mxu0  ;;  %v246_v46 = vpop.f32.mrb[15].mxu1 }
 0x13b   :  { %v402_v47 = vpack.c.bf16 %v198_v45, %v196_v43  ;;  %v410_v48 = vpack.c.bf16 %v246_v46, %v244_v44 }
 0x13d   :  { %352 = vst [vmem:[#allocation7 + $0x38] sm:$0xff] %v402_v47  ;;  %360 = vst [vmem:[#allocation7 + $0x78] sm:$0xff] %v410_v48 }
 0x13e   :  { %522 = shalt.err (!%p519_p6)
}
 0x13f   :  { %s523_s12 = scalar_lea.hbm %s622_s2, 2048 }
 0x140   :  { %p524_p7 = scmp.ne.s32.totalorder %s622_s2, %s523_s12  ;;  %p527_p8 = scmp.lt.u32.totalorder %s523_s12, %s622_s2 }
 0x142   :  { %p529_p9 = pnand %p527_p8, %p524_p7 }
 0x144   :  { %532 = shalt.err (!%p529_p9)
}
 0x145   :  { %372 = dma.vmem_to_hbm [thread:$0]  %s367_s8, 2048, %s622_s2, [#allocation4], %s540_s19, %s540_s19, %s541_s20  }
 0x146   :  { %537 = dma.done.wait [#allocation4], 2048  }
 0x147   :  { %538 = vsyncadd [#allocation4], 4294965248 }
 0x148   :  { %376 = vsyncpa [#allocation3], 1 }
 0x149   :  { %377 = vsyncpa [#allocation6], 1 }
 0x14a   :  { %378 = vsyncpa [#allocation4], 1 }

// kernel: ltconv_forward.5
= control target key start
LH: loop header
LB: loop body
LE: loop exit
PB: predicated region body
PF: predicated region fallthrough
CT: control target
= control target key end

     0   :  { %9 = vsyncpa [#allocation4], 0  ;;  %s1219_s0 = inlined_call_operand.hbm [shape: bf16[128,128], index: 0, kind: input, shape index: {}]   ;;  %s1220_s1 = inlined_call_operand.hbm [shape: bf16[128,256], index: 1, kind: input, shape index: {}]   ;;  %s1221_s2 = inlined_call_operand.hbm [shape: f32[128,128], index: 2, kind: input, shape index: {}, may-alias: {2,4}]   ;;  %s1222_s3 = inlined_call_operand.hbm [shape: f32[1,256], index: 3, kind: input, shape index: {}]   ;;  %s1223_s4 = inlined_call_operand.hbm [shape: f32[128,128], index: 4, kind: output, shape index: {}, may-alias: {2,4}]  }
   0x1   :  { %10 = vsyncpa [#allocation7], 0 }
   0x2   :  { %11 = vsyncpa [#allocation10], 0 }
   0x3   :  { %12 = vsyncpa [#allocation5], 0  ;;  %s1015_s15 = smov [#allocation6]   ;;  %s897_s19 = scalar_lea.hbm %s1220_s1, 2048 }
   0x4   :  { %s30_s16 = sshll.u32 %s1015_s15, 4  ;;  %p898_p0 = scmp.ne.s32.totalorder %s1220_s1, %s897_s19  ;;  %s31_s16 = int_to_ptr.vmem [resolvable:$true] %s30_s16 }
   0x5   :  { %p901_p1 = scmp.lt.u32.totalorder %s897_s19, %s1220_s1 }
   0x7   :  { %p903_p2 = pnand %p901_p1, %p898_p0 }
   0x9   :  { %906 = shalt.err (!%p903_p2)
}
   0xa   :  { %s907_s24 = scalar_lea.vmem %s31_s16, 2048  ;;  %p912_p4 = scmp.lt.s32.totalorder %s31_s16, %s31_s16 }
   0xb   :  { %p908_p3 = scmp.ne.s32.totalorder %s31_s16, %s907_s24  ;;  %p913_p5 = scmp.lt.s32.totalorder %s907_s24, %s907_s24 }
   0xd   :  { %p914_p6 = por %p913_p5, %p912_p4 }
   0xf   :  { %p915_p7 = pnand %p914_p6, %p908_p3 }
  0x11   :  { %918 = shalt.err (!%p915_p7)
}
  0x12   :  { %s1016_s25 = smov 128   ;;  %s1017_s26 = smov 8  }
  0x13   :  { %36 = dma.hbm_to_vmem [thread:$0]  %s1220_s1, 2048, %s31_s16, [#allocation7], %s1016_s25, %s1016_s25, %s1017_s26  }
  0x14   :  { %s1018_s29 = smov [#allocation3]   ;;  %s919_s7 = scalar_lea.hbm %s1219_s0, 1024 }
  0x15   :  { %s18_s30 = sshll.u32 %s1018_s29, 4  ;;  %p920_p8 = scmp.ne.s32.totalorder %s1219_s0, %s919_s7  ;;  %s19_s30 = int_to_ptr.vmem [resolvable:$true] %s18_s30 }
  0x16   :  { %p923_p9 = scmp.lt.u32.totalorder %s919_s7, %s1219_s0 }
  0x18   :  { %p925_p10 = pnand %p923_p9, %p920_p8 }
  0x1a   :  { %928 = shalt.err (!%p925_p10)
}
  0x1b   :  { %s929_s12 = scalar_lea.vmem %s19_s30, 1024  ;;  %p934_p12 = scmp.lt.s32.totalorder %s19_s30, %s19_s30 }
  0x1c   :  { %p930_p11 = scmp.ne.s32.totalorder %s19_s30, %s929_s12  ;;  %p935_p13 = scmp.lt.s32.totalorder %s929_s12, %s929_s12 }
  0x1e   :  { %p936_p0 = por %p935_p13, %p934_p12 }
  0x20   :  { %p937_p1 = pnand %p936_p0, %p930_p11 }
  0x22   :  { %940 = shalt.err (!%p937_p1)
}
  0x23   :  { %s1019_s1 = smov 64   ;;  %s1020_s13 = smov 4  }
  0x24   :  { %24 = dma.hbm_to_vmem [thread:$0]  %s1219_s0, 1024, %s19_s30, [#allocation4], %s1019_s1, %s1019_s1, %s1020_s13  }
  0x25   :  { %s1021_s16 = smov [#allocation8]   ;;  %s1022_s18 = smov [#allocation9]  }
  0x26   :  { %s42_s17 = sshll.u32 %s1021_s16, 4  ;;  %s55_s19 = sshll.u32 %s1022_s18, 4  ;;  %s43_s17 = int_to_ptr.vmem [resolvable:$true] %s42_s17  ;;  %s56_s19 = int_to_ptr.vmem [resolvable:$true] %s55_s19 }
  0x27   :  { %s941_s22 = scalar_lea.hbm %s1221_s2, 2048 }
  0x28   :  { %p942_p2 = scmp.ne.s32.totalorder %s1221_s2, %s941_s22  ;;  %p945_p3 = scmp.lt.u32.totalorder %s941_s22, %s1221_s2 }
  0x2a   :  { %p947_p4 = pnand %p945_p3, %p942_p2 }
  0x2c   :  { %950 = shalt.err (!%p947_p4)
}
  0x2d   :  { %s951_s0 = scalar_lea.vmem %s43_s17, 2048  ;;  %p956_p6 = scmp.lt.s32.totalorder %s43_s17, %s43_s17 }
  0x2e   :  { %p952_p5 = scmp.ne.s32.totalorder %s43_s17, %s951_s0  ;;  %p957_p7 = scmp.lt.s32.totalorder %s951_s0, %s951_s0 }
  0x30   :  { %p958_p8 = por %p957_p7, %p956_p6 }
  0x32   :  { %p959_p9 = pnand %p958_p8, %p952_p5 }
  0x34   :  { %962 = shalt.err (!%p959_p9)
}
  0x35   :  { %48 = dma.hbm_to_vmem [thread:$0]  %s1221_s2, 2048, %s43_s17, [#allocation7], %s1016_s25, %s1016_s25, %s1017_s26  }
  0x36   :  { %s963_s7 = scalar_lea.hbm %s1222_s3, 32 }
  0x37   :  { %p964_p10 = scmp.ne.s32.totalorder %s1222_s3, %s963_s7  ;;  %p967_p11 = scmp.lt.u32.totalorder %s963_s7, %s1222_s3 }
  0x39   :  { %p969_p12 = pnand %p967_p11, %p964_p10 }
  0x3b   :  { %972 = shalt.err (!%p969_p12)
}
  0x3c   :  { %s973_s12 = scalar_lea.vmem %s56_s19, 32  ;;  %p978_p0 = scmp.lt.s32.totalorder %s56_s19, %s56_s19 }
  0x3d   :  { %p974_p13 = scmp.ne.s32.totalorder %s56_s19, %s973_s12  ;;  %p979_p1 = scmp.lt.s32.totalorder %s973_s12, %s973_s12 }
  0x3f   :  { %p980_p2 = por %p979_p1, %p978_p0 }
  0x41   :  { %p981_p3 = pnand %p980_p2, %p974_p13 }
  0x43   :  { %984 = shalt.err (!%p981_p3)
}
  0x44   :  { %58 = dma.hbm_to_vmem [thread:$0]  %s1222_s3, 32, %s56_s19, [#allocation10]  }
  0x45   :  { %1007 = dma.done.wait [#allocation4], 1024  }
  0x46   :  { %1008 = vsyncadd [#allocation4], 4294966272 }
  0x47   :  { %1009 = dma.done.wait [#allocation7], 4096  }
  0x48   :  { %1010 = vsyncadd [#allocation7], 4294963200 }
  0x49   :  { %1011 = dma.done.wait [#allocation10], 32  }
  0x4a   :  { %1012 = vsyncadd [#allocation10], 4294967264  ;;  %v1023_v0 = vmov 0   ;;  %v801_v1 = vld [vmem:[#allocation6 + $0x4] ss:$8 sps:$4 sm:$0xff]   ;;  %v829_v21 = vld [vmem:[#allocation3 + $0x10] sm:$0xff]   ;;  %v514_v25 = vlaneseq }
  0x4b   :  { %332 = vmatprep.mubr.bf16.mxu0 %v1023_v0  ;;  %372 = vmatprep.mubr.bf16.mxu1 %v1023_v0  ;;  %v803_v2 = vld [vmem:[#allocation6] ss:$8 sps:$4 sm:$0xff]   ;;  %v804_v3 = vld [vmem:[#allocation6 + $0x14] ss:$8 sps:$4 sm:$0xff]   ;;  %v806_v4 = vld [vmem:[#allocation6 + $0x10] ss:$8 sps:$4 sm:$0xff]  }
  0x4c   :  { %300 = vmatprep.subr.bf16.mxu0 %v801_v1  ;;  %775 = vmatprep.subr.bf16.mxu1 %v801_v1  ;;  %v807_v5 = vld [vmem:[#allocation6 + $0x24] ss:$8 sps:$4 sm:$0xff]   ;;  %v809_v6 = vld [vmem:[#allocation6 + $0x20] ss:$8 sps:$4 sm:$0xff]   ;;  %v810_v7 = vld [vmem:[#allocation6 + $0x34] ss:$8 sps:$4 sm:$0xff]  }
  0x4d   :  { %301 = vmatpush1.bf16.msra.mxu0 %v803_v2  ;;  %783 = vmatpush1.bf16.msra.mxu1 %v803_v2  ;;  %v812_v8 = vld [vmem:[#allocation6 + $0x30] ss:$8 sps:$4 sm:$0xff]   ;;  %v813_v9 = vld [vmem:[#allocation6 + $0x44] ss:$8 sps:$4 sm:$0xff]   ;;  %v815_v10 = vld [vmem:[#allocation6 + $0x40] ss:$8 sps:$4 sm:$0xff]  }
  0x4e   :  { %302 = vmatprep.subr.bf16.mxu0 %v804_v3  ;;  %776 = vmatprep.subr.bf16.mxu1 %v804_v3  ;;  %v816_v11 = vld [vmem:[#allocation6 + $0x54] ss:$8 sps:$4 sm:$0xff]   ;;  %v818_v12 = vld [vmem:[#allocation6 + $0x50] ss:$8 sps:$4 sm:$0xff]   ;;  %v819_v13 = vld [vmem:[#allocation6 + $0x64] ss:$8 sps:$4 sm:$0xff]  }
  0x4f   :  { %v821_v14 = vld [vmem:[#allocation6 + $0x60] ss:$8 sps:$4 sm:$0xff]   ;;  %v822_v15 = vld [vmem:[#allocation6 + $0x74] ss:$8 sps:$4 sm:$0xff]   ;;  %v824_v16 = vld [vmem:[#allocation6 + $0x70] ss:$8 sps:$4 sm:$0xff]  }
  0x50   :  { %v825_v17 = vld [vmem:[#allocation3] sm:$0xff]   ;;  %v827_v19 = vld [vmem:[#allocation3 + $0x8] sm:$0xff]   ;;  %v830_v22 = vld [vmem:[#allocation3 + $0x30] sm:$0xff]   ;;  %v1112_v26 = vshrl.u32 %v514_v25, 7  ;;  %s1024_s3 = smov [#allocation11]  }
  0x51   :  { %303 = vmatpush1.bf16.msra.mxu0 %v806_v4  ;;  %784 = vmatpush1.bf16.msra.mxu1 %v806_v4  ;;  %v826_v18 = vld [vmem:[#allocation3 + $0x20] sm:$0xff]   ;;  %v828_v20 = vld [vmem:[#allocation3 + $0x28] sm:$0xff]   ;;  %v831_v23 = vld [vmem:[#allocation3 + $0x18] sm:$0xff]   ;;  %s721_s13 = sshll.u32 %s1024_s3, 4  ;;  %s722_s13 = int_to_ptr.vmem [resolvable:$true] %s721_s13 }
  0x52   :  { %304 = vmatprep.subr.bf16.mxu0 %v807_v5  ;;  %777 = vmatprep.subr.bf16.mxu1 %v807_v5  ;;  %v832_v24 = vld [vmem:[#allocation3 + $0x38] sm:$0xff]   ;;  %v520_v27 = vsub.s32 1, %v1112_v26  ;;  %v1115_v28 = vld [vmem:[#allocation9] sm:$0x3]  ;;  %s985_s14 = scalar_lea.vmem %s722_s13, 2048  ;;  %p990_p5 = scmp.lt.s32.totalorder %s722_s13, %s722_s13 }
  0x53   :  { %p986_p4 = scmp.ne.s32.totalorder %s722_s13, %s985_s14  ;;  %p991_p6 = scmp.lt.s32.totalorder %s985_s14, %s985_s14 }
  0x54   :  { %v1118_v29 = vrot.slane %v1115_v28, %v520_v27 }
  0x55   :  { %305 = vmatpush1.bf16.msra.mxu0 %v809_v6  ;;  %785 = vmatpush1.bf16.msra.mxu1 %v809_v6  ;;  %p992_p7 = por %p991_p6, %p990_p5 }
  0x56   :  { %306 = vmatprep.subr.bf16.mxu0 %v810_v7  ;;  %778 = vmatprep.subr.bf16.mxu1 %v810_v7 }
  0x57   :  { %p993_p8 = pnand %p992_p7, %p986_p4 }
  0x59   :  { %307 = vmatpush1.bf16.msra.mxu0 %v812_v8  ;;  %786 = vmatpush1.bf16.msra.mxu1 %v812_v8 }
  0x5a   :  { %308 = vmatprep.subr.bf16.mxu0 %v813_v9  ;;  %779 = vmatprep.subr.bf16.mxu1 %v813_v9 }
  0x5d   :  { %309 = vmatpush1.bf16.msra.mxu0 %v815_v10  ;;  %787 = vmatpush1.bf16.msra.mxu1 %v815_v10 }
  0x5e   :  { %310 = vmatprep.subr.bf16.mxu0 %v816_v11  ;;  %780 = vmatprep.subr.bf16.mxu1 %v816_v11 }
  0x61   :  { %311 = vmatpush1.bf16.msra.mxu0 %v818_v12  ;;  %788 = vmatpush1.bf16.msra.mxu1 %v818_v12  ;;  %v516_v12 = vsub.s32 0, %v1112_v26 }
  0x62   :  { %312 = vmatprep.subr.bf16.mxu0 %v819_v13  ;;  %781 = vmatprep.subr.bf16.mxu1 %v819_v13 }
  0x65   :  { %313 = vmatpush1.bf16.msra.mxu0 %v821_v14  ;;  %789 = vmatpush1.bf16.msra.mxu1 %v821_v14 }
  0x66   :  { %314 = vmatprep.subr.bf16.mxu0 %v822_v15  ;;  %782 = vmatprep.subr.bf16.mxu1 %v822_v15 }
  0x69   :  { %315 = vmatpush1.bf16.msra.mxu0 %v824_v16  ;;  %790 = vmatpush1.bf16.msra.mxu1 %v824_v16 }
  0x6c   :  { %333 = vmatmul.mubr.bf16.vlgmr.msra.gmra.mrb[0].mxu0 %v825_v17  ;;  %373 = vmatmul.mubr.bf16.vlgmr.msra.gmra.mrb[0].mxu1 %v826_v18 }
  0x6d   :  { %342 = vmatprep.mubr.bf16.mxu0 %v1023_v0  ;;  %382 = vmatprep.mubr.bf16.mxu1 %v1023_v0 }
  0x74   :  { %343 = vmatmul.mubr.bf16.gmra.mrb[4].mxu0 %v827_v19  ;;  %383 = vmatmul.mubr.bf16.gmra.mrb[4].mxu1 %v828_v20 }
  0x75   :  { %352 = vmatprep.mubr.bf16.mxu0 %v1023_v0  ;;  %392 = vmatprep.mubr.bf16.mxu1 %v1023_v0 }
  0x7c   :  { %353 = vmatmul.mubr.bf16.gmra.mrb[8].mxu0 %v829_v21  ;;  %393 = vmatmul.mubr.bf16.gmra.mrb[8].mxu1 %v830_v22  ;;  %v1158_v21 = vrot.slane %v1115_v28, %v516_v12 }
  0x7d   :  { %362 = vmatprep.mubr.bf16.mxu0 %v1023_v0  ;;  %402 = vmatprep.mubr.bf16.mxu1 %v1023_v0 }
  0x84   :  { %363 = vmatmul.mubr.bf16.gmra.mrb[12].mxu0 %v831_v23  ;;  %403 = vmatmul.mubr.bf16.gmra.mrb[12].mxu1 %v832_v24 }
 0x13f   :  { %v1120_v30 = vpop.f32.mrb[0].mxu0  ;;  %v1122_v31 = vpop.f32.mrb[0].mxu1 }
 0x140   :  { %v336_v32 = vpop.f32.mrb[1].mxu0  ;;  %v376_v33 = vpop.f32.mrb[1].mxu1 }
 0x141   :  { %v525_v34 = vadd.f32 %v1118_v29, %v336_v32  ;;  %v541_v35 = vadd.f32 %v1118_v29, %v376_v33  ;;  %v1126_v36 = vpop.f32.mrb[2].mxu0  ;;  %v1128_v37 = vpop.f32.mrb[2].mxu1 }
 0x142   :  { %v340_v38 = vpop.f32.mrb[3].mxu0  ;;  %v380_v39 = vpop.f32.mrb[3].mxu1 }
 0x143   :  { %v759_v40 = vmul.f32 -1.442695, %v525_v34  ;;  %v767_v41 = vmul.f32 -1.442695, %v541_v35  ;;  %v527_v42 = vadd.f32 %v1118_v29, %v340_v38  ;;  %v543_v43 = vadd.f32 %v1118_v29, %v380_v39 }
 0x145   :  { %833 = vpow2.f32 %v759_v40  ;;  %v760_v44 = vmul.f32 -1.442695, %v527_v42  ;;  %v768_v45 = vmul.f32 -1.442695, %v543_v43  ;;  %v524_v43 = vadd.f32 %v1158_v21, %v1120_v30 }
 0x146   :  { %835 = vpow2.f32 %v767_v41 }
 0x147   :  { %837 = vpow2.f32 %v760_v44  ;;  %v1132_v46 = vpop.f32.mrb[4].mxu0  ;;  %v1134_v47 = vpop.f32.mrb[4].mxu1 }
 0x148   :  { %839 = vpow2.f32 %v768_v45  ;;  %v346_v48 = vpop.f32.mrb[5].mxu0  ;;  %v386_v49 = vpop.f32.mrb[5].mxu1 }
 0x149   :  { %v529_v50 = vadd.f32 %v1118_v29, %v346_v48  ;;  %v545_v51 = vadd.f32 %v1118_v29, %v386_v49  ;;  %v1138_v52 = vpop.f32.mrb[6].mxu0  ;;  %v1140_v53 = vpop.f32.mrb[6].mxu1 }
 0x14a   :  { %v350_v54 = vpop.f32.mrb[7].mxu0  ;;  %v390_v55 = vpop.f32.mrb[7].mxu1 }
 0x14b   :  { %v761_v56 = vmul.f32 -1.442695, %v529_v50  ;;  %v769_v57 = vmul.f32 -1.442695, %v545_v51  ;;  %v531_v58 = vadd.f32 %v1118_v29, %v350_v54  ;;  %v547_v59 = vadd.f32 %v1118_v29, %v390_v55 }
 0x14c   :  { %v540_v55 = vadd.f32 %v1158_v21, %v1122_v31 }
 0x14d   :  { %841 = vpow2.f32 %v761_v56  ;;  %v762_v60 = vmul.f32 -1.442695, %v531_v58  ;;  %v770_v61 = vmul.f32 -1.442695, %v547_v59  ;;  %v668_v56 = vld [vmem:[#allocation8] sm:$0xff] }
 0x14e   :  { %843 = vpow2.f32 %v769_v57 }
 0x14f   :  { %v834_v62 = vpop.eup %833  ;;  %845 = vpow2.f32 %v762_v60  ;;  %v1144_v63 = vpop.f32.mrb[8].mxu0  ;;  %v676_v60 = vld [vmem:[#allocation8 + $0x40] sm:$0xff] }
 0x150   :  { %v1146_v0 = vpop.f32.mrb[8].mxu1  ;;  %v836_v1 = vpop.eup %835  ;;  %v604_v2 = vadd.f32 1.0, %v834_v62  ;;  %847 = vpow2.f32 %v770_v61  ;;  %v526_v61 = vadd.f32 %v1158_v21, %v1126_v36  ;;  %v542_v62 = vadd.f32 %v1158_v21, %v1128_v37 }
 0x151   :  { %v356_v3 = vpop.f32.mrb[9].mxu0  ;;  %v396_v4 = vpop.f32.mrb[9].mxu1  ;;  %v612_v6 = vadd.f32 1.0, %v836_v1 }
 0x152   :  { %v838_v5 = vpop.eup %837  ;;  %v533_v7 = vadd.f32 %v1118_v29, %v356_v3  ;;  %v549_v8 = vadd.f32 %v1118_v29, %v396_v4  ;;  %v1150_v9 = vpop.f32.mrb[10].mxu0  ;;  %849 = vrcp.f32 %v604_v2  ;;  %v669_v3 = vld [vmem:[#allocation8 + $0x8] sm:$0xff] }
 0x153   :  { %v1152_v10 = vpop.f32.mrb[10].mxu1  ;;  %v840_v11 = vpop.eup %839  ;;  %v605_v13 = vadd.f32 1.0, %v838_v5  ;;  %851 = vrcp.f32 %v612_v6 }
 0x154   :  { %v360_v14 = vpop.f32.mrb[11].mxu0  ;;  %v400_v15 = vpop.f32.mrb[11].mxu1  ;;  %v613_v16 = vadd.f32 1.0, %v840_v11  ;;  %v763_v17 = vmul.f32 -1.442695, %v533_v7 }
 0x155   :  { %v771_v18 = vmul.f32 -1.442695, %v549_v8  ;;  %853 = vrcp.f32 %v605_v13  ;;  %v535_v19 = vadd.f32 %v1118_v29, %v360_v14  ;;  %v551_v20 = vadd.f32 %v1118_v29, %v400_v15 }
 0x156   :  { %855 = vrcp.f32 %v613_v16 }
 0x157   :  { %857 = vpow2.f32 %v763_v17  ;;  %v764_v22 = vmul.f32 -1.442695, %v535_v19  ;;  %v772_v23 = vmul.f32 -1.442695, %v551_v20  ;;  %v842_v24 = vpop.eup %841  ;;  %v1160_v25 = vpop.f32.mrb[12].mxu0 }
 0x158   :  { %859 = vpow2.f32 %v771_v18  ;;  %v1162_v26 = vpop.f32.mrb[12].mxu1  ;;  %v844_v27 = vpop.eup %843  ;;  %v606_v32 = vadd.f32 1.0, %v842_v24  ;;  %v528_v18 = vadd.f32 %v1158_v21, %v1132_v46  ;;  %v546_v46 = vadd.f32 %v1158_v21, %v1140_v53 }
 0x159   :  { %861 = vpow2.f32 %v764_v22  ;;  %v366_v33 = vpop.f32.mrb[13].mxu0  ;;  %v406_v34 = vpop.f32.mrb[13].mxu1  ;;  %v614_v38 = vadd.f32 1.0, %v844_v27  ;;  %v544_v22 = vadd.f32 %v1158_v21, %v1134_v47 }
 0x15a   :  { %v846_v35 = vpop.eup %845  ;;  %863 = vpow2.f32 %v772_v23  ;;  %v537_v28 = vadd.f32 %v1118_v29, %v366_v33  ;;  %v553_v39 = vadd.f32 %v1118_v29, %v406_v34  ;;  %v1166_v40 = vpop.f32.mrb[14].mxu0  ;;  %v670_v23 = vld [vmem:[#allocation8 + $0x10] sm:$0xff]  ;;  %v530_v34 = vadd.f32 %v1158_v21, %v1138_v52 }
 0x15b   :  { %v1168_v41 = vpop.f32.mrb[14].mxu1  ;;  %v848_v42 = vpop.eup %847  ;;  %865 = vrcp.f32 %v606_v32  ;;  %v607_v44 = vadd.f32 1.0, %v846_v35  ;;  %v678_v33 = vld [vmem:[#allocation8 + $0x50] sm:$0xff] }
 0x15c   :  { %v370_v45 = vpop.f32.mrb[15].mxu0  ;;  %v410_v48 = vpop.f32.mrb[15].mxu1  ;;  %867 = vrcp.f32 %v614_v38  ;;  %v615_v49 = vadd.f32 1.0, %v848_v42  ;;  %v765_v50 = vmul.f32 -1.442695, %v537_v28  ;;  %v671_v28 = vld [vmem:[#allocation8 + $0x18] sm:$0xff] }
 0x15d   :  { %v773_v51 = vmul.f32 -1.442695, %v553_v39  ;;  %v850_v54 = vpop.eup %849  ;;  %869 = vrcp.f32 %v607_v44  ;;  %v539_v57 = vadd.f32 %v1118_v29, %v370_v45  ;;  %v555_v58 = vadd.f32 %v1118_v29, %v410_v48  ;;  %v677_v29 = vld [vmem:[#allocation8 + $0x48] sm:$0xff] }
 0x15e   :  { %v852_v59 = vpop.eup %851  ;;  %v652_v30 = vmul.f32 %v850_v54, %v524_v43  ;;  %871 = vrcp.f32 %v615_v49  ;;  %v679_v43 = vld [vmem:[#allocation8 + $0x58] sm:$0xff] }
 0x15f   :  { %v854_v1 = vpop.eup %853  ;;  %v660_v2 = vmul.f32 %v852_v59, %v540_v55  ;;  %873 = vpow2.f32 %v765_v50  ;;  %v766_v31 = vmul.f32 -1.442695, %v539_v57  ;;  %v774_v4 = vmul.f32 -1.442695, %v555_v58 }
 0x160   :  { %v856_v5 = vpop.eup %855  ;;  %v684_v6 = vadd.f32 %v668_v56, %v652_v30  ;;  %v653_v7 = vmul.f32 %v854_v1, %v526_v61  ;;  %875 = vpow2.f32 %v773_v51  ;;  %v532_v57 = vadd.f32 %v1158_v21, %v1144_v63  ;;  %v680_v1 = vld [vmem:[#allocation8 + $0x60] sm:$0xff] }
 0x161   :  { %v858_v8 = vpop.eup %857  ;;  %v692_v11 = vadd.f32 %v676_v60, %v660_v2  ;;  %v661_v12 = vmul.f32 %v856_v5, %v542_v62  ;;  %877 = vpow2.f32 %v766_v31  ;;  %v548_v30 = vadd.f32 %v1158_v21, %v1146_v0  ;;  %v672_v60 = vld [vmem:[#allocation8 + $0x20] sm:$0xff] }
 0x162   :  { %v860_v36 = vpop.eup %859  ;;  %700 = vst [vmem:[#allocation11] sm:$0xff] %v684_v6  ;;  %v685_v13 = vadd.f32 %v669_v3, %v653_v7  ;;  %v608_v37 = vadd.f32 1.0, %v858_v8  ;;  %879 = vpow2.f32 %v774_v4  ;;  %v534_v2 = vadd.f32 %v1158_v21, %v1150_v9  ;;  %v673_v4 = vld [vmem:[#allocation8 + $0x28] sm:$0xff] }
 0x163   :  { %v862_v14 = vpop.eup %861  ;;  %708 = vst [vmem:[#allocation11 + $0x40] sm:$0xff] %v692_v11  ;;  %v693_v15 = vadd.f32 %v677_v29, %v661_v12  ;;  %v616_v16 = vadd.f32 1.0, %v860_v36  ;;  %v550_v63 = vadd.f32 %v1158_v21, %v1152_v10  ;;  %v681_v29 = vld [vmem:[#allocation8 + $0x68] sm:$0xff]  ;;  %v536_v9 = vadd.f32 %v1158_v21, %v1160_v25 }
 0x164   :  { %v864_v17 = vpop.eup %863  ;;  %701 = vst [vmem:[#allocation11 + $0x8] sm:$0xff] %v685_v13  ;;  %881 = vrcp.f32 %v608_v37  ;;  %v609_v19 = vadd.f32 1.0, %v862_v14  ;;  %v552_v10 = vadd.f32 %v1158_v21, %v1162_v26  ;;  %v674_v13 = vld [vmem:[#allocation8 + $0x30] sm:$0xff] }
 0x165   :  { %v866_v20 = vpop.eup %865  ;;  %709 = vst [vmem:[#allocation11 + $0x48] sm:$0xff] %v693_v15  ;;  %883 = vrcp.f32 %v616_v16  ;;  %v617_v24 = vadd.f32 1.0, %v864_v17  ;;  %v682_v15 = vld [vmem:[#allocation8 + $0x70] sm:$0xff]  ;;  %v538_v16 = vadd.f32 %v1158_v21, %v1166_v40 }
 0x166   :  { %v868_v27 = vpop.eup %867  ;;  %v654_v32 = vmul.f32 %v866_v20, %v528_v18  ;;  %885 = vrcp.f32 %v609_v19  ;;  %v554_v19 = vadd.f32 %v1158_v21, %v1168_v41  ;;  %v675_v20 = vld [vmem:[#allocation8 + $0x38] sm:$0xff] }
 0x167   :  { %v870_v35 = vpop.eup %869  ;;  %v662_v38 = vmul.f32 %v868_v27, %v544_v22  ;;  %887 = vrcp.f32 %v617_v24  ;;  %v683_v24 = vld [vmem:[#allocation8 + $0x78] sm:$0xff] }
 0x168   :  { %v872_v39 = vpop.eup %871  ;;  %v686_v42 = vadd.f32 %v670_v23, %v654_v32  ;;  %v655_v47 = vmul.f32 %v870_v35, %v530_v34 }
 0x169   :  { %v874_v44 = vpop.eup %873  ;;  %v694_v45 = vadd.f32 %v678_v33, %v662_v38  ;;  %v663_v48 = vmul.f32 %v872_v39, %v546_v46 }
 0x16a   :  { %v876_v49 = vpop.eup %875  ;;  %702 = vst [vmem:[#allocation11 + $0x10] sm:$0xff] %v686_v42  ;;  %v687_v50 = vadd.f32 %v671_v28, %v655_v47  ;;  %v610_v51 = vadd.f32 1.0, %v874_v44 }
 0x16b   :  { %v878_v52 = vpop.eup %877  ;;  %710 = vst [vmem:[#allocation11 + $0x50] sm:$0xff] %v694_v45  ;;  %v695_v54 = vadd.f32 %v679_v43, %v663_v48  ;;  %v618_v55 = vadd.f32 1.0, %v876_v49 }
 0x16c   :  { %v880_v56 = vpop.eup %879  ;;  %703 = vst [vmem:[#allocation11 + $0x18] sm:$0xff] %v687_v50  ;;  %889 = vrcp.f32 %v610_v51  ;;  %v611_v53 = vadd.f32 1.0, %v878_v52 }
 0x16d   :  { %711 = vst [vmem:[#allocation11 + $0x58] sm:$0xff] %v695_v54  ;;  %891 = vrcp.f32 %v618_v55  ;;  %v619_v58 = vadd.f32 1.0, %v880_v56 }
 0x16e   :  { %v882_v59 = vpop.eup %881  ;;  %893 = vrcp.f32 %v611_v53 }
 0x16f   :  { %v884_v61 = vpop.eup %883  ;;  %v656_v62 = vmul.f32 %v882_v59, %v532_v57  ;;  %895 = vrcp.f32 %v619_v58 }
 0x170   :  { %v886_v3 = vpop.eup %885  ;;  %v664_v31 = vmul.f32 %v884_v61, %v548_v30 }
 0x171   :  { %v888_v5 = vpop.eup %887  ;;  %v688_v6 = vadd.f32 %v672_v60, %v656_v62  ;;  %v657_v7 = vmul.f32 %v886_v3, %v534_v2 }
 0x172   :  { %v696_v0 = vadd.f32 %v680_v1, %v664_v31  ;;  %v665_v8 = vmul.f32 %v888_v5, %v550_v63 }
 0x173   :  { %704 = vst [vmem:[#allocation11 + $0x20] sm:$0xff] %v688_v6  ;;  %v689_v11 = vadd.f32 %v673_v4, %v657_v7 }
 0x174   :  { %712 = vst [vmem:[#allocation11 + $0x60] sm:$0xff] %v696_v0  ;;  %v697_v12 = vadd.f32 %v681_v29, %v665_v8 }
 0x175   :  { %705 = vst [vmem:[#allocation11 + $0x28] sm:$0xff] %v689_v11 }
 0x176   :  { %v890_v36 = vpop.eup %889  ;;  %713 = vst [vmem:[#allocation11 + $0x68] sm:$0xff] %v697_v12 }
 0x177   :  { %v892_v37 = vpop.eup %891  ;;  %v658_v14 = vmul.f32 %v890_v36, %v536_v9 }
 0x178   :  { %v894_v17 = vpop.eup %893  ;;  %v666_v18 = vmul.f32 %v892_v37, %v552_v10 }
 0x179   :  { %v896_v22 = vpop.eup %895  ;;  %v690_v25 = vadd.f32 %v674_v13, %v658_v14  ;;  %v659_v23 = vmul.f32 %v894_v17, %v538_v16 }
 0x17a   :  { %v698_v26 = vadd.f32 %v682_v15, %v666_v18  ;;  %v667_v27 = vmul.f32 %v896_v22, %v554_v19 }
 0x17b   :  { %706 = vst [vmem:[#allocation11 + $0x30] sm:$0xff] %v690_v25  ;;  %v691_v32 = vadd.f32 %v675_v20, %v659_v23 }
 0x17c   :  { %714 = vst [vmem:[#allocation11 + $0x70] sm:$0xff] %v698_v26  ;;  %v699_v33 = vadd.f32 %v683_v24, %v667_v27 }
 0x17d   :  { %707 = vst [vmem:[#allocation11 + $0x38] sm:$0xff] %v691_v32 }
 0x17e   :  { %715 = vst [vmem:[#allocation11 + $0x78] sm:$0xff] %v699_v33 }
 0x17f   :  { %996 = shalt.err (!%p993_p8)
}
 0x180   :  { %s997_s17 = scalar_lea.hbm %s1223_s4, 2048 }
 0x181   :  { %p998_p9 = scmp.ne.s32.totalorder %s1223_s4, %s997_s17  ;;  %p1001_p10 = scmp.lt.u32.totalorder %s997_s17, %s1223_s4 }
 0x183   :  { %p1003_p11 = pnand %p1001_p10, %p998_p9 }
 0x185   :  { %1006 = shalt.err (!%p1003_p11)
}
 0x186   :  { %727 = dma.vmem_to_hbm [thread:$0]  %s722_s13, 2048, %s1223_s4, [#allocation5], %s1016_s25, %s1016_s25, %s1017_s26  }
 0x187   :  { %1013 = dma.done.wait [#allocation5], 2048  }
 0x188   :  { %1014 = vsyncadd [#allocation5], 4294965248 }
 0x189   :  { %731 = vsyncpa [#allocation4], 1 }
 0x18a   :  { %732 = vsyncpa [#allocation7], 1 }
 0x18b   :  { %733 = vsyncpa [#allocation10], 1 }
 0x18c   :  { %734 = vsyncpa [#allocation5], 1 }

</bundles_post_ra>
